<compile_context>
chip_gen: v5e
topology: v5e:2x2
jax: 0.10.0
libtpu: 0.0.40
codegen_flags: <defaults>
</compile_context>

<pallas_src>
import functools

import jax
import jax.numpy as jnp
from jax.experimental import pallas as pl
from jax.experimental.pallas import tpu as pltpu


def _basic_block_kernel(x_ref, masks_ref, w1_ref, s1_ref, b1_ref,
                        w2_ref, s2_ref, b2_ref, o_ref, patches_ref, *, W):
    """Fused BasicBlock for a block of NB images.

    x_ref:       (NB, C, H*W)   io dtype  activations, flattened NCHW
    masks_ref:   (9, H*W)       bf16      {0,1} validity mask per 3x3 tap
    w*_ref:      (C, 9*C)       bf16      raw conv weights, tap-major
    s*_ref:      (C, 1)         f32       BN scale  gamma / sqrt(var + eps)
    b*_ref:      (C, 1)         f32       BN bias   beta - mean * scale
    o_ref:       (NB, C, H*W)   io dtype  output, same layout as x_ref
    patches_ref: (9*C, NB*H*W)  bf16      im2col scratch (single materialization)
    """
    NB, C, HW = x_ref.shape
    masks = masks_ref[...]                                    # (9, HW) bf16

    def im2col(src_f32, nb):
        # 3x3 im2col of one (C, HW) image: lane rotations (XLU slot) + tap-mask
        # multiplies (VPU slot); each tap is cast to bf16 once and written
        # straight into the patch scratch at lane offset nb*HW.
        for k in range(9):
            dy, dx = k // 3 - 1, k % 3 - 1
            off = dy * W + dx                                 # flattened offset
            if off == 0:
                tb = src_f32.astype(jnp.bfloat16)
            else:
                # tap[p] = src[(p + off) mod HW]; out-of-image positions (row /
                # column halos and the mod-HW wrap) are zeroed by the tap mask.
                t = pltpu.roll(src_f32, shift=(-off) % HW, axis=1)
                tb = t.astype(jnp.bfloat16) * masks[k:k + 1, :]
            patches_ref[k * C:(k + 1) * C, nb * HW:(nb + 1) * HW] = tb

    def conv_bn(w_ref, s_ref, b_ref):
        # One MXU matmul per conv: (C, 9C) @ (9C, NB*HW), f32 accumulation.
        # Eval-mode BN is a per-channel f32 scale + bias epilogue.
        acc = jnp.dot(w_ref[...], patches_ref[...],
                      preferred_element_type=jnp.float32)     # (C, NB*HW) f32
        return acc * s_ref[...] + b_ref[...]

    # conv1 -> bn1 -> relu   (intermediate never leaves VMEM / vregs)
    for nb in range(NB):
        im2col(x_ref[nb].astype(jnp.float32), nb)
    out1 = jnp.maximum(conv_bn(w1_ref, s1_ref, b1_ref), 0.0)  # (C, NB*HW) f32

    # conv2 -> bn2 -> + residual -> relu
    for nb in range(NB):
        im2col(out1[:, nb * HW:(nb + 1) * HW], nb)
    out2 = conv_bn(w2_ref, s2_ref, b2_ref)                    # (C, NB*HW) f32
    for nb in range(NB):
        res = out2[:, nb * HW:(nb + 1) * HW] + x_ref[nb].astype(jnp.float32)
        o_ref[nb] = jnp.maximum(res, 0.0).astype(o_ref.dtype)


def _fold_bn(gamma, beta, mean, var, eps=1e-5):
    scale = gamma / jnp.sqrt(var + eps)
    bias = beta - mean * scale
    return scale, bias


def _tap_major_weight(w_oihw):
    """(Cout, Cin, 3, 3) torch-layout conv weight -> (Cout, 9*Cin) bf16,
    tap-major / channel-minor to match the im2col patch layout.  The BN scale
    is intentionally NOT folded in (it is applied in f32 in the epilogue)."""
    cout, cin = w_oihw.shape[0], w_oihw.shape[1]
    w = jnp.transpose(w_oihw, (0, 2, 3, 1)).reshape(cout, 9 * cin)
    return w.astype(jnp.bfloat16)


def _tap_masks(H, W):
    """(9, H*W) {0,1} bf16 validity masks for the 3x3 taps of a flattened
    image; zero wherever the neighbour pixel falls outside the image (this
    also kills the wrap-around introduced by pltpu.roll)."""
    row = jnp.arange(H * W, dtype=jnp.int32) // W
    col = jnp.arange(H * W, dtype=jnp.int32) % W
    masks = []
    for k in range(9):
        dy, dx = k // 3 - 1, k % 3 - 1
        ok = ((row + dy >= 0) & (row + dy < H) &
              (col + dx >= 0) & (col + dx < W))
        masks.append(ok)
    return jnp.stack(masks).astype(jnp.bfloat16)


def _default_images_per_step(n, c, hw, itemsize):
    """Largest images-per-step that (a) divides the batch, (b) keeps >= 2 grid
    steps when possible (2 TensorCores on v7x), and (c) keeps the
    double-buffered activation blocks a couple of MiB (fits v7x's 64 MiB)."""
    budget = 2 * 1024 * 1024
    for cand in range(n, 0, -1):
        if n % cand:
            continue
        if n >= 2 and n // cand < 2:
            continue
        if cand * c * hw * itemsize > budget:
            continue
        return cand
    return 1


@functools.partial(jax.jit, static_argnames=("images_per_step", "io_dtype"))
def basic_block_forward(x_nchw, params, *, images_per_step=None, io_dtype=None):
    """Pallas BasicBlock.forward (NCHW in / NCHW out), eval-mode BN."""
    N, C, H, W = x_nchw.shape
    # Default BasicBlock config only: stride=1, dilation=1, no downsample
    # (=> inplanes == planes).  Fail loudly for anything else.
    assert params["conv1_w"].shape == (C, C, 3, 3), params["conv1_w"].shape
    assert params["conv2_w"].shape == (C, C, 3, 3), params["conv2_w"].shape
    HW = H * W
    io_dtype = jnp.dtype(x_nchw.dtype) if io_dtype is None else jnp.dtype(io_dtype)

    NB = (images_per_step if images_per_step is not None
          else _default_images_per_step(N, C, HW, io_dtype.itemsize))
    assert N % NB == 0, (N, NB)

    s1, b1 = _fold_bn(params["bn1_gamma"], params["bn1_beta"],
                      params["bn1_mean"], params["bn1_var"])
    s2, b2 = _fold_bn(params["bn2_gamma"], params["bn2_beta"],
                      params["bn2_mean"], params["bn2_var"])
    w1 = _tap_major_weight(params["conv1_w"])          # raw bf16 weights
    w2 = _tap_major_weight(params["conv2_w"])
    s1 = s1.reshape(C, 1).astype(jnp.float32)
    s2 = s2.reshape(C, 1).astype(jnp.float32)
    b1 = b1.reshape(C, 1).astype(jnp.float32)
    b2 = b2.reshape(C, 1).astype(jnp.float32)
    masks = _tap_masks(H, W)                            # (9, HW) bf16

    x_flat = x_nchw.reshape(N, C, HW).astype(io_dtype)  # free reshape, lane-dense

    # Grid-invariant operands (masks / weights / BN scale+bias) live whole in
    # VMEM for the entire call: copied once, never double-buffered.
    resident = pl.BlockSpec(memory_space=pltpu.MemorySpace.VMEM)

    kernel = functools.partial(_basic_block_kernel, W=W)
    out = pl.pallas_call(
        kernel,
        out_shape=jax.ShapeDtypeStruct((N, C, HW), io_dtype),
        grid=(N // NB,),
        in_specs=[
            pl.BlockSpec((NB, C, HW), lambda n: (n, 0, 0)),   # activations
            resident,                                         # tap masks
            resident, resident, resident,                     # w1, s1, b1
            resident, resident, resident,                     # w2, s2, b2
        ],
        out_specs=pl.BlockSpec((NB, C, HW), lambda n: (n, 0, 0)),
        scratch_shapes=[pltpu.VMEM((9 * C, NB * HW), jnp.bfloat16)],
        compiler_params=pltpu.CompilerParams(
            dimension_semantics=("parallel",),
            vmem_limit_bytes=64 * 1024 * 1024),
    )(x_flat, masks, w1, s1, b1, w2, s2, b2)
    return out.reshape(N, C, H, W)


def reference_forward(x_nchw, params):
    """Pure-JAX reference (lax conv, f32) for validation."""
    dn = ("NCHW", "OIHW", "NCHW")

    def conv(x, w):
        return jax.lax.conv_general_dilated(
            x, w, (1, 1), ((1, 1), (1, 1)), dimension_numbers=dn,
            precision=jax.lax.Precision.HIGHEST)

    def bn(x, g, b, m, v, eps=1e-5):
        rs = lambda a: a.reshape(1, -1, 1, 1)
        return (x - rs(m)) / jnp.sqrt(rs(v) + eps) * rs(g) + rs(b)

    out = jnp.maximum(bn(conv(x_nchw, params["conv1_w"]), params["bn1_gamma"],
                         params["bn1_beta"], params["bn1_mean"], params["bn1_var"]), 0.0)
    out = bn(conv(out, params["conv2_w"]), params["bn2_gamma"],
             params["bn2_beta"], params["bn2_mean"], params["bn2_var"]) + x_nchw
    return jnp.maximum(out, 0.0)


if __name__ == "__main__":
    # BasicBlock(inplanes=4, planes=4, stride=1, downsample=None) — the
    # repeated building block of the resnet34 backbone inside Projector.
    N, C, H, W = 2, 4, 16, 16
    key = jax.random.PRNGKey(0)
    keys = jax.random.split(key, 12)

    params = {
        "conv1_w": 0.1 * jax.random.normal(keys[0], (C, C, 3, 3), jnp.float32),
        "conv2_w": 0.1 * jax.random.normal(keys[1], (C, C, 3, 3), jnp.float32),
        "bn1_gamma": 1.0 + 0.1 * jax.random.normal(keys[2], (C,), jnp.float32),
        "bn1_beta": 0.1 * jax.random.normal(keys[3], (C,), jnp.float32),
        "bn1_mean": 0.1 * jax.random.normal(keys[4], (C,), jnp.float32),
        "bn1_var": 0.5 + jnp.abs(jax.random.normal(keys[5], (C,), jnp.float32)),
        "bn2_gamma": 1.0 + 0.1 * jax.random.normal(keys[6], (C,), jnp.float32),
        "bn2_beta": 0.1 * jax.random.normal(keys[7], (C,), jnp.float32),
        "bn2_mean": 0.1 * jax.random.normal(keys[8], (C,), jnp.float32),
        "bn2_var": 0.5 + jnp.abs(jax.random.normal(keys[9], (C,), jnp.float32)),
    }
    x = jax.random.normal(keys[10], (N, C, H, W), jnp.float32)

    # f32 activation I/O, 1 image per step -> grid=(2,) (keeps both v7x TCs busy).
    out = basic_block_forward(x, params)
    out = jax.block_until_ready(out)
    assert out.shape == (N, C, H, W), out.shape
    ref = jax.block_until_ready(reference_forward(x, params))
    err = float(jnp.max(jnp.abs(out - ref)))
    assert err < 2e-2, f"max abs error vs reference (f32 I/O): {err}"

    # Batched path: 2 images per grid step folded into the matmul lane axis,
    # bf16 activation I/O (halves HBM traffic on v5e; accumulation stays f32).
    x4 = jax.random.normal(keys[11], (4, C, H, W), jnp.float32)
    out4 = basic_block_forward(x4, params, images_per_step=2,
                               io_dtype=jnp.bfloat16)
    out4 = jax.block_until_ready(out4)
    ref4 = jax.block_until_ready(reference_forward(x4, params))
    err4 = float(jnp.max(jnp.abs(out4.astype(jnp.float32) - ref4)))
    assert err4 < 1e-1, f"max abs error vs reference (bf16 I/O): {err4}"

    print("KERNEL_OK")
</pallas_src>

<mosaic_0001>
module attributes {stable_mosaic.version = 11 : i64} {
  func.func @_basic_block_kernel(%arg0: i32, %arg1: memref<1x4x256xf32, #tpu.memory_space<vmem>>, %arg2: memref<9x256xbf16, #tpu.memory_space<vmem>>, %arg3: memref<4x36xbf16, #tpu.memory_space<vmem>>, %arg4: memref<4x1xf32, #tpu.memory_space<vmem>>, %arg5: memref<4x1xf32, #tpu.memory_space<vmem>>, %arg6: memref<4x36xbf16, #tpu.memory_space<vmem>>, %arg7: memref<4x1xf32, #tpu.memory_space<vmem>>, %arg8: memref<4x1xf32, #tpu.memory_space<vmem>>, %arg9: memref<1x4x256xf32, #tpu.memory_space<vmem>>, %arg10: memref<36x256xbf16, #tpu.memory_space<vmem>>) attributes {dimension_semantics = [#tpu.dimension_semantics<parallel>], iteration_bounds = array<i64: 2>, scalar_prefetch = 0 : i64, scratch_operands = 1 : i64, tpu.core_type = #tpu.core_type<tc>, window_params = [{transform_indices = @transform_0, window_bounds = array<i64: 1, 4, 256>}, {pipeline_mode = #tpu.pipeline_mode<synchronous>, transform_indices = @transform_1, window_bounds = array<i64: 9, 256>}, {pipeline_mode = #tpu.pipeline_mode<synchronous>, transform_indices = @transform_2, window_bounds = array<i64: 4, 36>}, {pipeline_mode = #tpu.pipeline_mode<synchronous>, transform_indices = @transform_3, window_bounds = array<i64: 4, 1>}, {pipeline_mode = #tpu.pipeline_mode<synchronous>, transform_indices = @transform_4, window_bounds = array<i64: 4, 1>}, {pipeline_mode = #tpu.pipeline_mode<synchronous>, transform_indices = @transform_5, window_bounds = array<i64: 4, 36>}, {pipeline_mode = #tpu.pipeline_mode<synchronous>, transform_indices = @transform_6, window_bounds = array<i64: 4, 1>}, {pipeline_mode = #tpu.pipeline_mode<synchronous>, transform_indices = @transform_7, window_bounds = array<i64: 4, 1>}, {transform_indices = @transform_8, window_bounds = array<i64: 1, 4, 256>}]} {
    %c0 = arith.constant 0 : index
    %c0_0 = arith.constant 0 : index
    %0 = vector.load %arg2[%c0, %c0_0] : memref<9x256xbf16, #tpu.memory_space<vmem>>, vector<9x256xbf16>
    %c0_1 = arith.constant 0 : index
    %c0_2 = arith.constant 0 : index
    %c0_3 = arith.constant 0 : index
    %1 = vector.load %arg1[%c0_1, %c0_2, %c0_3] : memref<1x4x256xf32, #tpu.memory_space<vmem>>, vector<1x4x256xf32>
    %2 = vector.shape_cast %1 : vector<1x4x256xf32> to vector<4x256xf32>
    %c17_i32 = arith.constant 17 : i32
    %3 = tpu.dynamic_rotate %2 by %c17_i32 dim 1 : vector<4x256xf32>, i32 -> vector<4x256xf32>
    %4 = arith.truncf %3 : vector<4x256xf32> to vector<4x256xbf16>
    %5 = vector.extract_strided_slice %0 {offsets = [0, 0], sizes = [1, 256], strides = [1, 1]} : vector<9x256xbf16> to vector<1x256xbf16>
    %6 = vector.broadcast %5 : vector<1x256xbf16> to vector<4x256xbf16>
    %7 = arith.mulf %4, %6 : vector<4x256xbf16>
    %c0_4 = arith.constant 0 : index
    %c0_5 = arith.constant 0 : index
    %8 = vector.load %arg10[%c0_4, %c0_5] : memref<36x256xbf16, #tpu.memory_space<vmem>>, vector<4x256xbf16>
    tpu.vector_store %arg10[%c0_4, %c0_5], %7 {strides = array<i32>} : memref<36x256xbf16, #tpu.memory_space<vmem>>, vector<4x256xbf16>,
    %c16_i32 = arith.constant 16 : i32
    %9 = tpu.dynamic_rotate %2 by %c16_i32 dim 1 : vector<4x256xf32>, i32 -> vector<4x256xf32>
    %10 = arith.truncf %9 : vector<4x256xf32> to vector<4x256xbf16>
    %11 = vector.extract_strided_slice %0 {offsets = [1, 0], sizes = [1, 256], strides = [1, 1]} : vector<9x256xbf16> to vector<1x256xbf16>
    %12 = vector.broadcast %11 : vector<1x256xbf16> to vector<4x256xbf16>
    %13 = arith.mulf %10, %12 : vector<4x256xbf16>
    %c4 = arith.constant 4 : index
    %c0_6 = arith.constant 0 : index
    %14 = vector.load %arg10[%c4, %c0_6] : memref<36x256xbf16, #tpu.memory_space<vmem>>, vector<4x256xbf16>
    tpu.vector_store %arg10[%c4, %c0_6], %13 {strides = array<i32>} : memref<36x256xbf16, #tpu.memory_space<vmem>>, vector<4x256xbf16>,
    %c15_i32 = arith.constant 15 : i32
    %15 = tpu.dynamic_rotate %2 by %c15_i32 dim 1 : vector<4x256xf32>, i32 -> vector<4x256xf32>
    %16 = arith.truncf %15 : vector<4x256xf32> to vector<4x256xbf16>
    %17 = vector.extract_strided_slice %0 {offsets = [2, 0], sizes = [1, 256], strides = [1, 1]} : vector<9x256xbf16> to vector<1x256xbf16>
    %18 = vector.broadcast %17 : vector<1x256xbf16> to vector<4x256xbf16>
    %19 = arith.mulf %16, %18 : vector<4x256xbf16>
    %c8 = arith.constant 8 : index
    %c0_7 = arith.constant 0 : index
    %20 = vector.load %arg10[%c8, %c0_7] : memref<36x256xbf16, #tpu.memory_space<vmem>>, vector<4x256xbf16>
    tpu.vector_store %arg10[%c8, %c0_7], %19 {strides = array<i32>} : memref<36x256xbf16, #tpu.memory_space<vmem>>, vector<4x256xbf16>,
    %c1_i32 = arith.constant 1 : i32
    %21 = tpu.dynamic_rotate %2 by %c1_i32 dim 1 : vector<4x256xf32>, i32 -> vector<4x256xf32>
    %22 = arith.truncf %21 : vector<4x256xf32> to vector<4x256xbf16>
    %23 = vector.extract_strided_slice %0 {offsets = [3, 0], sizes = [1, 256], strides = [1, 1]} : vector<9x256xbf16> to vector<1x256xbf16>
    %24 = vector.broadcast %23 : vector<1x256xbf16> to vector<4x256xbf16>
    %25 = arith.mulf %22, %24 : vector<4x256xbf16>
    %c12 = arith.constant 12 : index
    %c0_8 = arith.constant 0 : index
    %26 = vector.load %arg10[%c12, %c0_8] : memref<36x256xbf16, #tpu.memory_space<vmem>>, vector<4x256xbf16>
    tpu.vector_store %arg10[%c12, %c0_8], %25 {strides = array<i32>} : memref<36x256xbf16, #tpu.memory_space<vmem>>, vector<4x256xbf16>,
    %27 = arith.truncf %2 : vector<4x256xf32> to vector<4x256xbf16>
    %c16 = arith.constant 16 : index
    %c0_9 = arith.constant 0 : index
    %28 = vector.load %arg10[%c16, %c0_9] : memref<36x256xbf16, #tpu.memory_space<vmem>>, vector<4x256xbf16>
    tpu.vector_store %arg10[%c16, %c0_9], %27 {strides = array<i32>} : memref<36x256xbf16, #tpu.memory_space<vmem>>, vector<4x256xbf16>,
    %c255_i32 = arith.constant 255 : i32
    %29 = tpu.dynamic_rotate %2 by %c255_i32 dim 1 : vector<4x256xf32>, i32 -> vector<4x256xf32>
    %30 = arith.truncf %29 : vector<4x256xf32> to vector<4x256xbf16>
    %31 = vector.extract_strided_slice %0 {offsets = [5, 0], sizes = [1, 256], strides = [1, 1]} : vector<9x256xbf16> to vector<1x256xbf16>
    %32 = vector.broadcast %31 : vector<1x256xbf16> to vector<4x256xbf16>
    %33 = arith.mulf %30, %32 : vector<4x256xbf16>
    %c20 = arith.constant 20 : index
    %c0_10 = arith.constant 0 : index
    %34 = vector.load %arg10[%c20, %c0_10] : memref<36x256xbf16, #tpu.memory_space<vmem>>, vector<4x256xbf16>
    tpu.vector_store %arg10[%c20, %c0_10], %33 {strides = array<i32>} : memref<36x256xbf16, #tpu.memory_space<vmem>>, vector<4x256xbf16>,
    %c241_i32 = arith.constant 241 : i32
    %35 = tpu.dynamic_rotate %2 by %c241_i32 dim 1 : vector<4x256xf32>, i32 -> vector<4x256xf32>
    %36 = arith.truncf %35 : vector<4x256xf32> to vector<4x256xbf16>
    %37 = vector.extract_strided_slice %0 {offsets = [6, 0], sizes = [1, 256], strides = [1, 1]} : vector<9x256xbf16> to vector<1x256xbf16>
    %38 = vector.broadcast %37 : vector<1x256xbf16> to vector<4x256xbf16>
    %39 = arith.mulf %36, %38 : vector<4x256xbf16>
    %c24 = arith.constant 24 : index
    %c0_11 = arith.constant 0 : index
    %40 = vector.load %arg10[%c24, %c0_11] : memref<36x256xbf16, #tpu.memory_space<vmem>>, vector<4x256xbf16>
    tpu.vector_store %arg10[%c24, %c0_11], %39 {strides = array<i32>} : memref<36x256xbf16, #tpu.memory_space<vmem>>, vector<4x256xbf16>,
    %c240_i32 = arith.constant 240 : i32
    %41 = tpu.dynamic_rotate %2 by %c240_i32 dim 1 : vector<4x256xf32>, i32 -> vector<4x256xf32>
    %42 = arith.truncf %41 : vector<4x256xf32> to vector<4x256xbf16>
    %43 = vector.extract_strided_slice %0 {offsets = [7, 0], sizes = [1, 256], strides = [1, 1]} : vector<9x256xbf16> to vector<1x256xbf16>
    %44 = vector.broadcast %43 : vector<1x256xbf16> to vector<4x256xbf16>
    %45 = arith.mulf %42, %44 : vector<4x256xbf16>
    %c28 = arith.constant 28 : index
    %c0_12 = arith.constant 0 : index
    %46 = vector.load %arg10[%c28, %c0_12] : memref<36x256xbf16, #tpu.memory_space<vmem>>, vector<4x256xbf16>
    tpu.vector_store %arg10[%c28, %c0_12], %45 {strides = array<i32>} : memref<36x256xbf16, #tpu.memory_space<vmem>>, vector<4x256xbf16>,
    %c239_i32 = arith.constant 239 : i32
    %47 = tpu.dynamic_rotate %2 by %c239_i32 dim 1 : vector<4x256xf32>, i32 -> vector<4x256xf32>
    %48 = arith.truncf %47 : vector<4x256xf32> to vector<4x256xbf16>
    %49 = vector.extract_strided_slice %0 {offsets = [8, 0], sizes = [1, 256], strides = [1, 1]} : vector<9x256xbf16> to vector<1x256xbf16>
    %50 = vector.broadcast %49 : vector<1x256xbf16> to vector<4x256xbf16>
    %51 = arith.mulf %48, %50 : vector<4x256xbf16>
    %c32 = arith.constant 32 : index
    %c0_13 = arith.constant 0 : index
    %52 = vector.load %arg10[%c32, %c0_13] : memref<36x256xbf16, #tpu.memory_space<vmem>>, vector<4x256xbf16>
    tpu.vector_store %arg10[%c32, %c0_13], %51 {strides = array<i32>} : memref<36x256xbf16, #tpu.memory_space<vmem>>, vector<4x256xbf16>,
    %c0_14 = arith.constant 0 : index
    %c0_15 = arith.constant 0 : index
    %53 = vector.load %arg3[%c0_14, %c0_15] : memref<4x36xbf16, #tpu.memory_space<vmem>>, vector<4x36xbf16>
    %c0_16 = arith.constant 0 : index
    %c0_17 = arith.constant 0 : index
    %54 = vector.load %arg10[%c0_16, %c0_17] : memref<36x256xbf16, #tpu.memory_space<vmem>>, vector<36x256xbf16>
    %cst = arith.constant dense<0.000000e+00> : vector<4x256xf32>
    %55 = tpu.matmul %53, %54, %cst {dimension_numbers = #tpu.dot_dimension_numbers<[1], [0], [0], [1], [0, 0, 1, 1], [], []>} : vector<4x36xbf16>, vector<36x256xbf16>, vector<4x256xf32> -> vector<4x256xf32>
    %c0_18 = arith.constant 0 : index
    %c0_19 = arith.constant 0 : index
    %56 = vector.load %arg4[%c0_18, %c0_19] : memref<4x1xf32, #tpu.memory_space<vmem>>, vector<4x1xf32>
    %57 = vector.broadcast %56 : vector<4x1xf32> to vector<4x256xf32>
    %58 = arith.mulf %55, %57 : vector<4x256xf32>
    %c0_20 = arith.constant 0 : index
    %c0_21 = arith.constant 0 : index
    %59 = vector.load %arg5[%c0_20, %c0_21] : memref<4x1xf32, #tpu.memory_space<vmem>>, vector<4x1xf32>
    %60 = vector.broadcast %59 : vector<4x1xf32> to vector<4x256xf32>
    %61 = arith.addf %58, %60 : vector<4x256xf32>
    %cst_22 = arith.constant 0.000000e+00 : f32
    %62 = vector.broadcast %cst_22 : f32 to vector<4x256xf32>
    %63 = arith.maximumf %61, %62 : vector<4x256xf32>
    %c17_i32_23 = arith.constant 17 : i32
    %64 = tpu.dynamic_rotate %63 by %c17_i32_23 dim 1 : vector<4x256xf32>, i32 -> vector<4x256xf32>
    %65 = arith.truncf %64 : vector<4x256xf32> to vector<4x256xbf16>
    %66 = vector.extract_strided_slice %0 {offsets = [0, 0], sizes = [1, 256], strides = [1, 1]} : vector<9x256xbf16> to vector<1x256xbf16>
    %67 = vector.broadcast %66 : vector<1x256xbf16> to vector<4x256xbf16>
    %68 = arith.mulf %65, %67 : vector<4x256xbf16>
    %c0_24 = arith.constant 0 : index
    %c0_25 = arith.constant 0 : index
    %69 = vector.load %arg10[%c0_24, %c0_25] : memref<36x256xbf16, #tpu.memory_space<vmem>>, vector<4x256xbf16>
    tpu.vector_store %arg10[%c0_24, %c0_25], %68 {strides = array<i32>} : memref<36x256xbf16, #tpu.memory_space<vmem>>, vector<4x256xbf16>,
    %c16_i32_26 = arith.constant 16 : i32
    %70 = tpu.dynamic_rotate %63 by %c16_i32_26 dim 1 : vector<4x256xf32>, i32 -> vector<4x256xf32>
    %71 = arith.truncf %70 : vector<4x256xf32> to vector<4x256xbf16>
    %72 = vector.extract_strided_slice %0 {offsets = [1, 0], sizes = [1, 256], strides = [1, 1]} : vector<9x256xbf16> to vector<1x256xbf16>
    %73 = vector.broadcast %72 : vector<1x256xbf16> to vector<4x256xbf16>
    %74 = arith.mulf %71, %73 : vector<4x256xbf16>
    %c4_27 = arith.constant 4 : index
    %c0_28 = arith.constant 0 : index
    %75 = vector.load %arg10[%c4_27, %c0_28] : memref<36x256xbf16, #tpu.memory_space<vmem>>, vector<4x256xbf16>
    tpu.vector_store %arg10[%c4_27, %c0_28], %74 {strides = array<i32>} : memref<36x256xbf16, #tpu.memory_space<vmem>>, vector<4x256xbf16>,
    %c15_i32_29 = arith.constant 15 : i32
    %76 = tpu.dynamic_rotate %63 by %c15_i32_29 dim 1 : vector<4x256xf32>, i32 -> vector<4x256xf32>
    %77 = arith.truncf %76 : vector<4x256xf32> to vector<4x256xbf16>
    %78 = vector.extract_strided_slice %0 {offsets = [2, 0], sizes = [1, 256], strides = [1, 1]} : vector<9x256xbf16> to vector<1x256xbf16>
    %79 = vector.broadcast %78 : vector<1x256xbf16> to vector<4x256xbf16>
    %80 = arith.mulf %77, %79 : vector<4x256xbf16>
    %c8_30 = arith.constant 8 : index
    %c0_31 = arith.constant 0 : index
    %81 = vector.load %arg10[%c8_30, %c0_31] : memref<36x256xbf16, #tpu.memory_space<vmem>>, vector<4x256xbf16>
    tpu.vector_store %arg10[%c8_30, %c0_31], %80 {strides = array<i32>} : memref<36x256xbf16, #tpu.memory_space<vmem>>, vector<4x256xbf16>,
    %c1_i32_32 = arith.constant 1 : i32
    %82 = tpu.dynamic_rotate %63 by %c1_i32_32 dim 1 : vector<4x256xf32>, i32 -> vector<4x256xf32>
    %83 = arith.truncf %82 : vector<4x256xf32> to vector<4x256xbf16>
    %84 = vector.extract_strided_slice %0 {offsets = [3, 0], sizes = [1, 256], strides = [1, 1]} : vector<9x256xbf16> to vector<1x256xbf16>
    %85 = vector.broadcast %84 : vector<1x256xbf16> to vector<4x256xbf16>
    %86 = arith.mulf %83, %85 : vector<4x256xbf16>
    %c12_33 = arith.constant 12 : index
    %c0_34 = arith.constant 0 : index
    %87 = vector.load %arg10[%c12_33, %c0_34] : memref<36x256xbf16, #tpu.memory_space<vmem>>, vector<4x256xbf16>
    tpu.vector_store %arg10[%c12_33, %c0_34], %86 {strides = array<i32>} : memref<36x256xbf16, #tpu.memory_space<vmem>>, vector<4x256xbf16>,
    %88 = arith.truncf %63 : vector<4x256xf32> to vector<4x256xbf16>
    %c16_35 = arith.constant 16 : index
    %c0_36 = arith.constant 0 : index
    %89 = vector.load %arg10[%c16_35, %c0_36] : memref<36x256xbf16, #tpu.memory_space<vmem>>, vector<4x256xbf16>
    tpu.vector_store %arg10[%c16_35, %c0_36], %88 {strides = array<i32>} : memref<36x256xbf16, #tpu.memory_space<vmem>>, vector<4x256xbf16>,
    %c255_i32_37 = arith.constant 255 : i32
    %90 = tpu.dynamic_rotate %63 by %c255_i32_37 dim 1 : vector<4x256xf32>, i32 -> vector<4x256xf32>
    %91 = arith.truncf %90 : vector<4x256xf32> to vector<4x256xbf16>
    %92 = vector.extract_strided_slice %0 {offsets = [5, 0], sizes = [1, 256], strides = [1, 1]} : vector<9x256xbf16> to vector<1x256xbf16>
    %93 = vector.broadcast %92 : vector<1x256xbf16> to vector<4x256xbf16>
    %94 = arith.mulf %91, %93 : vector<4x256xbf16>
    %c20_38 = arith.constant 20 : index
    %c0_39 = arith.constant 0 : index
    %95 = vector.load %arg10[%c20_38, %c0_39] : memref<36x256xbf16, #tpu.memory_space<vmem>>, vector<4x256xbf16>
    tpu.vector_store %arg10[%c20_38, %c0_39], %94 {strides = array<i32>} : memref<36x256xbf16, #tpu.memory_space<vmem>>, vector<4x256xbf16>,
    %c241_i32_40 = arith.constant 241 : i32
    %96 = tpu.dynamic_rotate %63 by %c241_i32_40 dim 1 : vector<4x256xf32>, i32 -> vector<4x256xf32>
    %97 = arith.truncf %96 : vector<4x256xf32> to vector<4x256xbf16>
    %98 = vector.extract_strided_slice %0 {offsets = [6, 0], sizes = [1, 256], strides = [1, 1]} : vector<9x256xbf16> to vector<1x256xbf16>
    %99 = vector.broadcast %98 : vector<1x256xbf16> to vector<4x256xbf16>
    %100 = arith.mulf %97, %99 : vector<4x256xbf16>
    %c24_41 = arith.constant 24 : index
    %c0_42 = arith.constant 0 : index
    %101 = vector.load %arg10[%c24_41, %c0_42] : memref<36x256xbf16, #tpu.memory_space<vmem>>, vector<4x256xbf16>
    tpu.vector_store %arg10[%c24_41, %c0_42], %100 {strides = array<i32>} : memref<36x256xbf16, #tpu.memory_space<vmem>>, vector<4x256xbf16>,
    %c240_i32_43 = arith.constant 240 : i32
    %102 = tpu.dynamic_rotate %63 by %c240_i32_43 dim 1 : vector<4x256xf32>, i32 -> vector<4x256xf32>
    %103 = arith.truncf %102 : vector<4x256xf32> to vector<4x256xbf16>
    %104 = vector.extract_strided_slice %0 {offsets = [7, 0], sizes = [1, 256], strides = [1, 1]} : vector<9x256xbf16> to vector<1x256xbf16>
    %105 = vector.broadcast %104 : vector<1x256xbf16> to vector<4x256xbf16>
    %106 = arith.mulf %103, %105 : vector<4x256xbf16>
    %c28_44 = arith.constant 28 : index
    %c0_45 = arith.constant 0 : index
    %107 = vector.load %arg10[%c28_44, %c0_45] : memref<36x256xbf16, #tpu.memory_space<vmem>>, vector<4x256xbf16>
    tpu.vector_store %arg10[%c28_44, %c0_45], %106 {strides = array<i32>} : memref<36x256xbf16, #tpu.memory_space<vmem>>, vector<4x256xbf16>,
    %c239_i32_46 = arith.constant 239 : i32
    %108 = tpu.dynamic_rotate %63 by %c239_i32_46 dim 1 : vector<4x256xf32>, i32 -> vector<4x256xf32>
    %109 = arith.truncf %108 : vector<4x256xf32> to vector<4x256xbf16>
    %110 = vector.extract_strided_slice %0 {offsets = [8, 0], sizes = [1, 256], strides = [1, 1]} : vector<9x256xbf16> to vector<1x256xbf16>
    %111 = vector.broadcast %110 : vector<1x256xbf16> to vector<4x256xbf16>
    %112 = arith.mulf %109, %111 : vector<4x256xbf16>
    %c32_47 = arith.constant 32 : index
    %c0_48 = arith.constant 0 : index
    %113 = vector.load %arg10[%c32_47, %c0_48] : memref<36x256xbf16, #tpu.memory_space<vmem>>, vector<4x256xbf16>
    tpu.vector_store %arg10[%c32_47, %c0_48], %112 {strides = array<i32>} : memref<36x256xbf16, #tpu.memory_space<vmem>>, vector<4x256xbf16>,
    %c0_49 = arith.constant 0 : index
    %c0_50 = arith.constant 0 : index
    %114 = vector.load %arg6[%c0_49, %c0_50] : memref<4x36xbf16, #tpu.memory_space<vmem>>, vector<4x36xbf16>
    %c0_51 = arith.constant 0 : index
    %c0_52 = arith.constant 0 : index
    %115 = vector.load %arg10[%c0_51, %c0_52] : memref<36x256xbf16, #tpu.memory_space<vmem>>, vector<36x256xbf16>
    %cst_53 = arith.constant dense<0.000000e+00> : vector<4x256xf32>
    %116 = tpu.matmul %114, %115, %cst_53 {dimension_numbers = #tpu.dot_dimension_numbers<[1], [0], [0], [1], [0, 0, 1, 1], [], []>} : vector<4x36xbf16>, vector<36x256xbf16>, vector<4x256xf32> -> vector<4x256xf32>
    %c0_54 = arith.constant 0 : index
    %c0_55 = arith.constant 0 : index
    %117 = vector.load %arg7[%c0_54, %c0_55] : memref<4x1xf32, #tpu.memory_space<vmem>>, vector<4x1xf32>
    %118 = vector.broadcast %117 : vector<4x1xf32> to vector<4x256xf32>
    %119 = arith.mulf %116, %118 : vector<4x256xf32>
    %c0_56 = arith.constant 0 : index
    %c0_57 = arith.constant 0 : index
    %120 = vector.load %arg8[%c0_56, %c0_57] : memref<4x1xf32, #tpu.memory_space<vmem>>, vector<4x1xf32>
    %121 = vector.broadcast %120 : vector<4x1xf32> to vector<4x256xf32>
    %122 = arith.addf %119, %121 : vector<4x256xf32>
    %c0_58 = arith.constant 0 : index
    %c0_59 = arith.constant 0 : index
    %c0_60 = arith.constant 0 : index
    %123 = vector.load %arg1[%c0_58, %c0_59, %c0_60] : memref<1x4x256xf32, #tpu.memory_space<vmem>>, vector<1x4x256xf32>
    %124 = vector.shape_cast %123 : vector<1x4x256xf32> to vector<4x256xf32>
    %125 = arith.addf %122, %124 : vector<4x256xf32>
    %cst_61 = arith.constant 0.000000e+00 : f32
    %126 = vector.broadcast %cst_61 : f32 to vector<4x256xf32>
    %127 = arith.maximumf %125, %126 : vector<4x256xf32>
    %c0_62 = arith.constant 0 : index
    %c0_63 = arith.constant 0 : index
    %c0_64 = arith.constant 0 : index
    %128 = vector.load %arg9[%c0_62, %c0_63, %c0_64] : memref<1x4x256xf32, #tpu.memory_space<vmem>>, vector<1x4x256xf32>
    %129 = vector.shape_cast %128 : vector<1x4x256xf32> to vector<4x256xf32>
    %130 = vector.shape_cast %127 : vector<4x256xf32> to vector<1x4x256xf32>
    tpu.vector_store %arg9[%c0_62, %c0_63, %c0_64], %130 {strides = array<i32>} : memref<1x4x256xf32, #tpu.memory_space<vmem>>, vector<1x4x256xf32>,
    return
  }
  func.func @transform_0(%arg0: i32) -> (i32, i32, i32) {
    %c0_i32 = arith.constant 0 : i32
    %c0_i32_0 = arith.constant 0 : i32
    %c0_i32_1 = arith.constant 0 : i32
    return %arg0, %c0_i32, %c0_i32_0 : i32, i32, i32
  }
  func.func @transform_1(%arg0: i32) -> (i32, i32) {
    %c0_i32 = arith.constant 0 : i32
    %c0_i32_0 = arith.constant 0 : i32
    %c0_i32_1 = arith.constant 0 : i32
    return %c0_i32, %c0_i32_0 : i32, i32
  }
  func.func @transform_2(%arg0: i32) -> (i32, i32) {
    %c0_i32 = arith.constant 0 : i32
    %c0_i32_0 = arith.constant 0 : i32
    %c0_i32_1 = arith.constant 0 : i32
    return %c0_i32, %c0_i32_0 : i32, i32
  }
  func.func @transform_3(%arg0: i32) -> (i32, i32) {
    %c0_i32 = arith.constant 0 : i32
    %c0_i32_0 = arith.constant 0 : i32
    %c0_i32_1 = arith.constant 0 : i32
    return %c0_i32, %c0_i32_0 : i32, i32
  }
  func.func @transform_4(%arg0: i32) -> (i32, i32) {
    %c0_i32 = arith.constant 0 : i32
    %c0_i32_0 = arith.constant 0 : i32
    %c0_i32_1 = arith.constant 0 : i32
    return %c0_i32, %c0_i32_0 : i32, i32
  }
  func.func @transform_5(%arg0: i32) -> (i32, i32) {
    %c0_i32 = arith.constant 0 : i32
    %c0_i32_0 = arith.constant 0 : i32
    %c0_i32_1 = arith.constant 0 : i32
    return %c0_i32, %c0_i32_0 : i32, i32
  }
  func.func @transform_6(%arg0: i32) -> (i32, i32) {
    %c0_i32 = arith.constant 0 : i32
    %c0_i32_0 = arith.constant 0 : i32
    %c0_i32_1 = arith.constant 0 : i32
    return %c0_i32, %c0_i32_0 : i32, i32
  }
  func.func @transform_7(%arg0: i32) -> (i32, i32) {
    %c0_i32 = arith.constant 0 : i32
    %c0_i32_0 = arith.constant 0 : i32
    %c0_i32_1 = arith.constant 0 : i32
    return %c0_i32, %c0_i32_0 : i32, i32
  }
  func.func @transform_8(%arg0: i32) -> (i32, i32, i32) {
    %c0_i32 = arith.constant 0 : i32
    %c0_i32_0 = arith.constant 0 : i32
    %c0_i32_1 = arith.constant 0 : i32
    return %arg0, %c0_i32, %c0_i32_0 : i32, i32, i32
  }
}

</mosaic_0001>

<bundles_post_ra>
// kernel: basic_block_forward.1
= control target key start
LH: loop header
LB: loop body
LE: loop exit
PB: predicated region body
PF: predicated region fallthrough
CT: control target
= control target key end

     0   :  { %s1122_s27 = smov 0   ;;  %s1371_s0 = inlined_call_operand.vmem [shape: f32[2,4,256], index: 0, kind: input, shape index: {}]   ;;  %s1372_s1 = inlined_call_operand.vmem [shape: bf16[9,256], index: 1, kind: input, shape index: {}]   ;;  %s1373_s2 = inlined_call_operand.vmem [shape: bf16[4,36], index: 2, kind: input, shape index: {}]   ;;  %s1374_s3 = inlined_call_operand.vmem [shape: f32[4,1], index: 3, kind: input, shape index: {}]   ;;  %s1375_s4 = inlined_call_operand.vmem [shape: f32[4,1], index: 4, kind: input, shape index: {}]   ;;  %s1376_s5 = inlined_call_operand.vmem [shape: bf16[4,36], index: 5, kind: input, shape index: {}]   ;;  %s1377_s6 = inlined_call_operand.vmem [shape: f32[4,1], index: 6, kind: input, shape index: {}]   ;;  %s1378_s7 = inlined_call_operand.vmem [shape: f32[4,1], index: 7, kind: input, shape index: {}]   ;;  %s1379_s8 = inlined_call_operand.vmem [shape: f32[2,4,256], index: 8, kind: output, shape index: {}]  }
   0x1 LB: > { %s903_s28 = sadd.s32 4294967295, %s1066_s27   ;;  %p907_p0 = scmp.ge.s32.totalorder %s1066_s27, 1  ;;  %s1066_s27 = sphi %s1122_s27, %s18_s27  }
   0x2   : > { %p262_p1 = scmp.lt.s32.totalorder %s1066_s27, 3 }
   0x4   : > { %p263_p2 = pnand %p907_p0, %p262_p1 }
   0x5   : > { %p296_p3 = scmp.lt.s32.totalorder (!%p263_p2), %s903_s28, 1  ;;  %s1068_s11 = smov (!%p263_p2), 16  }
   0x6   : > { %266 = sbr.rel (%p263_p2) target bundleno = 680 (0x2a8), region = 52  ;;  %s1069_s12 = smov (!%p263_p2), 112  }
   0x7   : > { %s1070_s13 = smov (!%p263_p2), 1   ;;  %s1071_s14 = smov (!%p263_p2), 111  }
   0x8   : > { %s1072_s15 = smov (!%p263_p2), 113   ;;  %s1073_s16 = smov (!%p263_p2), 127  }
   0x9   : > { %s1074_s17 = smov (!%p263_p2), 15   ;;  %s1075_s18 = smov (!%p263_p2), 17  }
   0xb   : > { %s1381_s28 = smov (!%p296_p3, %s903_s28), 1  ;;  %v307_v27 = vld [vmem:[%s1372_s1] sm:$0xff]  ;;  %v320_v32 = vlaneseq  ;;  %v308_v46 = vld [vmem:[%s1372_s1 + $0x8] sm:$0x11]  ;;  %vm579_vm8 = vcmask 1041408   ;;  %vm575_vm9 = vcmask 293888  }
   0xc   : > { %s950_s29 = sshll.u32 %s1381_s28, 3  ;;  %v327_v28 = vunpack.c.l.b16 %v307_v27  ;;  %v328_v29 = vunpack.c.h.b16 %v307_v27  ;;  %v524_v54 = vunpack.c.l.b16 %v308_v46  ;;  %v525_v58 = vunpack.c.h.b16 %v308_v46 }
   0xd   : > { %s300_s10 = scalar_lea.vmem %s1371_s0, %s950_s29  ;;  %v1156_v35 = vand.u32 127, %v320_v32  ;;  %vm844_vm10 = vcmask 1043456  }
   0xe   : > { %v309_v0 = vld [vmem:[%s300_s10] sm:$0xff]  ;;  %v329_v30 = vpack.c.b16 %v327_v28, %v327_v28  ;;  %v1153_v31 = vpack.c.b16 %v328_v29, %v328_v29 }
   0xf   : > { %311 = vst [vmem:[#allocation1] ss:$2 sm:$0xff] %v309_v0  ;;  %vm356_vm0 = vcmp.lt.s32.totalorder %v1156_v35, 16  ;;  %vm411_vm1 = vcmp.lt.s32.totalorder %v1156_v35, 1  ;;  %vm493_vm2 = vcmp.lt.s32.totalorder %v1156_v35, 112  ;;  %vm519_vm3 = vcmp.lt.s32.totalorder %v1156_v35, 111 }
  0x10   : > { %v360_v33 = vshrl.u32 %v329_v30, 16  ;;  %v364_v34 = vshrl.u32 %v1153_v31, 16  ;;  %vm470_vm4 = vcmp.lt.s32.totalorder %v1156_v35, 113  ;;  %vm444_vm5 = vcmp.lt.s32.totalorder %v1156_v35, 127 }
  0x11   : > { %vm388_vm6 = vcmp.lt.s32.totalorder %v1156_v35, 15  ;;  %vm322_vm7 = vcmp.lt.s32.totalorder %v1156_v35, 17 }
  0x12   : > { %v1158_v39 = vpack.i.b16 %v360_v33, %v360_v33  ;;  %v1160_v40 = vpack.i.b16 %v364_v34, %v364_v34 }
  0x14   : > { %v363_v43 = vperm.slane %v1158_v39, 0  ;;  %v367_v44 = vperm.slane %v1160_v40, 0  ;;  %v415_v62 = vperm.slane %v1158_v39, 1  ;;  %v416_v63 = vperm.slane %v1160_v40, 1 }
  0x16   : > { %v312_v1 = vld.sshfl [vmem:[#allocation1] sm:$0xff pattern:$0x75316420]  ;;  %v313_v2 = vld.sshfl [vmem:[#allocation1 + $0x8] sm:$0xff pattern:$0x75316420]  ;;  %v1172_v47 = vunpack.c.l.bf16 %v363_v43  ;;  %v1174_v48 = vunpack.c.l.bf16 %v367_v44 }
  0x17   : > { %347 = vst [vmem:[#allocation1] ss:$2 sm:$0xff] %v309_v0  ;;  %v1007_v13 = vpack.i.bf16 %v313_v2, %v312_v1  ;;  %v526_v1 = vpack.c.b16 %v524_v54, %v524_v54  ;;  %v1185_v2 = vunpack.c.l.bf16 %v415_v62 }
  0x1e   : > { %v348_v3 = vld.sshfl [vmem:[#allocation1] sm:$0xff pattern:$0x75316420]  ;;  %v349_v4 = vld.sshfl [vmem:[#allocation1 + $0x8] sm:$0xff pattern:$0x75316420] }
  0x1f   : > { %379 = vst [vmem:[#allocation1] ss:$2 sm:$0xff] %v309_v0  ;;  %v997_v16 = vpack.i.bf16 %v349_v4, %v348_v3  ;;  %v1187_v3 = vunpack.c.l.bf16 %v416_v63 }
  0x21   : > { %998 = vrot.lane.b32.xlu2 %v997_v16, %s1068_s11 }
  0x26   : > { %v380_v5 = vld.sshfl [vmem:[#allocation1] sm:$0xff pattern:$0x75316420]  ;;  %v381_v6 = vld.sshfl [vmem:[#allocation1 + $0x8] sm:$0xff pattern:$0x75316420] }
  0x27   : > { %402 = vst [vmem:[#allocation1] ss:$2 sm:$0xff] %v309_v0  ;;  %v1012_v26 = vpack.i.bf16 %v381_v6, %v380_v5  ;;  %v527_v6 = vpack.c.b16 %v525_v58, %v525_v58 }
  0x2e   : > { %v403_v7 = vld.sshfl [vmem:[#allocation1] sm:$0xff pattern:$0x75316420]  ;;  %v404_v8 = vld.sshfl [vmem:[#allocation1 + $0x8] sm:$0xff pattern:$0x75316420] }
  0x2f   : > { %428 = vst [vmem:[#allocation1] ss:$2 sm:$0xff] %v309_v0  ;;  %v1002_v20 = vpack.i.bf16 %v404_v8, %v403_v7 }
  0x31   : > { %1003 = vrot.lane.b32.xlu2 %v1002_v20, %s1070_s13  ;;  %v1196_v20 = vpack.i.b16 %v329_v30, %v329_v30 }
  0x33   : > { %v474_v30 = vperm.slane %v1196_v20, 3  ;;  %v392_v63 = vperm.slane %v1196_v20, 1 }
  0x35   : > { %v1222_v46 = vunpack.c.l.bf16 %v474_v30 }
  0x36   : > { %v1138_v9 = vld.sshfl [vmem:[#allocation1] sm:$0xff pattern:$0x75316420]  ;;  %v1140_v10 = vld.sshfl [vmem:[#allocation1 + $0x8] sm:$0xff pattern:$0x75316420] }
  0x37   : > { %435 = vst [vmem:[#allocation1] ss:$2 sm:$0xff] %v309_v0 }
  0x3e   : > { %v436_v11 = vld.sshfl [vmem:[#allocation1] sm:$0xff pattern:$0x75316420]  ;;  %v437_v12 = vld.sshfl [vmem:[#allocation1 + $0x8] sm:$0xff pattern:$0x75316420] }
  0x3f   : > { %461 = vst [vmem:[#allocation1] ss:$2 sm:$0xff] %v309_v0  ;;  %v982_v25 = vpack.i.bf16 %v437_v12, %v436_v11  ;;  %v433_v11 = vpack.c.bf16 %v1140_v10, %v1138_v9  ;;  %v497_v12 = vperm.slane %v1158_v39, 3 }
  0x41   : > { %434 = vst [vmem:[#allocation2 + $0x10] sm:$0x33] %v433_v11 }
  0x46   : > { %v462_v14 = vld.sshfl [vmem:[#allocation1] sm:$0xff pattern:$0x75316420]  ;;  %v463_v15 = vld.sshfl [vmem:[#allocation1 + $0x8] sm:$0xff pattern:$0x75316420] }
  0x47   : > { %484 = vst [vmem:[#allocation1] ss:$2 sm:$0xff] %v309_v0  ;;  %v992_v21 = vpack.i.bf16 %v463_v15, %v462_v14  ;;  %v529_v15 = vpack.i.b16 %v526_v1, %v526_v1 }
  0x4e   : > { %v485_v17 = vld.sshfl [vmem:[#allocation1] sm:$0xff pattern:$0x75316420]  ;;  %v486_v18 = vld.sshfl [vmem:[#allocation1 + $0x8] sm:$0xff pattern:$0x75316420] }
  0x4f   : > { %v987_v19 = vpack.i.bf16 %v486_v18, %v485_v17  ;;  %510 = vst [vmem:[#allocation1] ss:$2 sm:$0xff] %v309_v0 }
  0x51   : > { %988 = vrot.lane.b32.xlu1 %v987_v19, %s1069_s12  ;;  %v533_v19 = vpack.i.b16 %v527_v6, %v527_v6 }
  0x53   : > { %v1212_v29 = vperm.slane %v533_v19, 0 }
  0x56   : > { %v511_v22 = vld.sshfl [vmem:[#allocation1] sm:$0xff pattern:$0x75316420]  ;;  %v512_v23 = vld.sshfl [vmem:[#allocation1 + $0x8] sm:$0xff pattern:$0x75316420] }
  0x57   : > { %v977_v24 = vpack.i.bf16 %v512_v23, %v511_v22  ;;  %832 = vst [vmem:[#allocation1] ss:$2 sm:$0xff] %v309_v0  ;;  %v1198_v22 = vunpack.c.l.bf16 %v497_v12 }
  0x59   : > { %978 = vrot.lane.b32.xlu0 %v977_v24, %s1071_s14  ;;  %993 = vrot.lane.b32.xlu1 %v992_v21, %s1072_s15 }
  0x61   : > { %983 = vrot.lane.b32.xlu0 %v982_v25, %s1073_s16  ;;  %1013 = vrot.lane.b32.xlu1 %v1012_v26, %s1074_s17  ;;  %v1206_v25 = vperm.slane %v529_v15, 0  ;;  %v1210_v26 = vpack.i.b16 %v1153_v31, %v1153_v31 }
  0x63   : > { %v538_v34 = vunpack.c.l.bf16 %v1206_v25  ;;  %v475_v31 = vperm.slane %v1210_v26, 3 }
  0x69   : > { %1008 = vrot.lane.b32.xlu0 %v1007_v13, %s1075_s18  ;;  %v498_v13 = vperm.slane %v1160_v40, 3 }
  0x6b   : > { %v1204_v23 = vunpack.c.l.bf16 %v498_v13 }
  0x7b   : > { %v999_v36 = vpop.permute.xlu2 %998 }
  0x7c   : > { %v1001_v37 = vunpack.i.h.bf16 %v999_v36  ;;  %v1000_v38 = vunpack.i.l.bf16 %v999_v36 }
  0x7e   : > { %v357_v41 = vsel %vm356_vm0, %v1000_v38, %v1001_v37  ;;  %v358_v42 = vsel %vm356_vm0, %v1001_v37, %v1000_v38 }
  0x7f   : > { %v359_v45 = vpack.c.bf16 %v357_v41, %v358_v42 }
  0x81   : > { %v368_v49 = vunpack.c.l.bf16 %v359_v45  ;;  %v369_v50 = vunpack.c.h.bf16 %v359_v45  ;;  %v539_v45 = vunpack.c.l.bf16 %v1212_v29 }
  0x83   : > { %v372_v51 = vmul.f32 %v1172_v47, %v368_v49  ;;  %v373_v52 = vmul.f32 %v1174_v48, %v369_v50  ;;  %v448_v49 = vperm.slane %v1158_v39, 2  ;;  %v449_v39 = vperm.slane %v1160_v40, 2 }
  0x85   : > { %v374_v57 = vpack.c.bf16 %v373_v52, %v372_v51  ;;  %v1237_v62 = vunpack.c.l.bf16 %v448_v49 }
  0x87   : > { %v376_v61 = vrot.slane %v374_v57, 6 }
  0x89   : > { %378 = vst [vmem:[#allocation2] sm:$0xcc] %v376_v61 }
  0x8b   : > { %v1004_v53 = vpop.permute.xlu2 %1003 }
  0x8c   : > { %v1006_v55 = vunpack.i.h.bf16 %v1004_v53  ;;  %v1005_v56 = vunpack.i.l.bf16 %v1004_v53 }
  0x8e   : > { %v412_v59 = vsel %vm411_vm1, %v1005_v56, %v1006_v55  ;;  %v413_v60 = vsel %vm411_vm1, %v1006_v55, %v1005_v56  ;;  %v1233_v56 = vunpack.c.l.bf16 %v475_v31 }
  0x8f   : > { %v414_v0 = vpack.c.bf16 %v412_v59, %v413_v60 }
  0x91   : > { %v417_v4 = vunpack.c.l.bf16 %v414_v0  ;;  %v418_v5 = vunpack.c.h.bf16 %v414_v0  ;;  %v393_v0 = vperm.slane %v1210_v26, 1 }
  0x93   : > { %v421_v7 = vmul.f32 %v1185_v2, %v417_v4  ;;  %v422_v8 = vmul.f32 %v1187_v3, %v418_v5  ;;  %v1266_v30 = vunpack.c.l.bf16 %v393_v0 }
  0x95   : > { %v423_v16 = vpack.c.bf16 %v422_v8, %v421_v7 }
  0x97   : > { %v425_v21 = vrot.slane %v423_v16, 6 }
  0x99   : > { %427 = vst [vmem:[#allocation2 + $0x8] sm:$0xcc] %v425_v21 }
  0xc3   : > { %v989_v14 = vpop.permute.xlu1 %988 }
  0xc4   : > { %v991_v17 = vunpack.i.h.bf16 %v989_v14  ;;  %v990_v18 = vunpack.i.l.bf16 %v989_v14  ;;  %v620_v14 = vld [vmem:[%s1375_s4] sm:$0xf] }
  0xc6   : > { %v494_v9 = vsel %vm493_vm2, %v990_v18, %v991_v17  ;;  %v495_v10 = vsel %vm493_vm2, %v991_v17, %v990_v18  ;;  %v1251_v17 = vunpack.c.l.bf16 %v449_v39  ;;  %v612_v18 = vld [vmem:[%s1374_s3] sm:$0xf] }
  0xc7   : > { %v496_v24 = vpack.c.bf16 %v495_v10, %v494_v9 }
  0xc9   : > { %v499_v27 = vunpack.c.l.bf16 %v496_v24  ;;  %v500_v28 = vunpack.c.h.bf16 %v496_v24  ;;  %v1076_v24 = vmov 0  }
  0xca   : > { %1018 = vset.pattern.permute.xlu0 %v1076_v24  ;;  %1017 = vset.pattern.permute.xlu2 %v1076_v24 }
  0xcb   : > { %v503_v32 = vmul.f32 %v1198_v22, %v499_v27  ;;  %v504_v33 = vmul.f32 %v1204_v23, %v500_v28  ;;  %v979_v36 = vpop.permute.xlu0 %978  ;;  %v994_v37 = vpop.permute.xlu1 %993  ;;  %v1264_v28 = vunpack.c.l.bf16 %v392_v63  ;;  %623 = vperm.xlu0 %1018, %v620_v14   ;;  %615 = vperm.xlu2 %1017, %v612_v18  }
  0xcc   : > { %v981_v38 = vunpack.i.h.bf16 %v979_v36  ;;  %v980_v41 = vunpack.i.l.bf16 %v979_v36  ;;  %v996_v42 = vunpack.i.h.bf16 %v994_v37  ;;  %v995_v43 = vunpack.i.l.bf16 %v994_v37  ;;  %1059 = vset.pattern.permute.xlu1 %v1076_v24 }
  0xcd   : > { %v505_v44 = vpack.c.bf16 %v504_v33, %v503_v32 }
  0xce   : > { %v520_v50 = vsel %vm519_vm3, %v980_v41, %v981_v38  ;;  %v521_v51 = vsel %vm519_vm3, %v981_v38, %v980_v41  ;;  %v471_v52 = vsel %vm470_vm4, %v995_v43, %v996_v42  ;;  %v472_v53 = vsel %vm470_vm4, %v996_v42, %v995_v43 }
  0xcf   : > { %v507_v54 = vrot.slane %v505_v44, 6  ;;  %v522_v55 = vpack.c.bf16 %v521_v51, %v520_v50  ;;  %v473_v57 = vpack.c.bf16 %v472_v53, %v471_v52  ;;  %v334_v38 = vperm.slane %v1196_v20, 0 }
  0xd0   : > { %v338_v41 = vperm.slane %v1210_v26, 0 }
  0xd1   : > { %509 = vst [vmem:[#allocation2 + $0x18] sm:$0xcc] %v507_v54  ;;  %v536_v58 = vunpack.c.l.bf16 %v522_v55  ;;  %v537_v59 = vunpack.c.h.bf16 %v522_v55  ;;  %v476_v60 = vunpack.c.l.bf16 %v473_v57  ;;  %v477_v61 = vunpack.c.h.bf16 %v473_v57 }
  0xd2   : > { %v1275_v55 = vunpack.c.l.bf16 %v334_v38  ;;  %v1277_v57 = vunpack.c.l.bf16 %v338_v41 }
  0xd3   : > { %v540_v1 = vmul.f32 %v538_v34, %v536_v58  ;;  %v541_v4 = vmul.f32 %v539_v45, %v537_v59  ;;  %v480_v40 = vmul.f32 %v1222_v46, %v476_v60  ;;  %v481_v5 = vmul.f32 %v1233_v56, %v477_v61  ;;  %v984_v6 = vpop.permute.xlu0 %983  ;;  %v1014_v7 = vpop.permute.xlu1 %1013 }
  0xd4   : > { %v986_v8 = vunpack.i.h.bf16 %v984_v6  ;;  %v985_v11 = vunpack.i.l.bf16 %v984_v6  ;;  %v1016_v12 = vunpack.i.h.bf16 %v1014_v7  ;;  %v1015_v13 = vunpack.i.l.bf16 %v1014_v7 }
  0xd5   : > { %v542_v15 = vpack.c.bf16 %v541_v4, %v540_v1  ;;  %v482_v16 = vpack.c.bf16 %v481_v5, %v480_v40 }
  0xd6   : > { %v445_v19 = vsel %vm444_vm5, %v985_v11, %v986_v8  ;;  %v446_v21 = vsel %vm444_vm5, %v986_v8, %v985_v11  ;;  %v389_v9 = vsel %vm388_vm6, %v1015_v13, %v1016_v12  ;;  %v390_v10 = vsel %vm388_vm6, %v1016_v12, %v1015_v13 }
  0xd7   : > { %543 = vst [vmem:[#allocation2 + $0x20] sm:$0x33] %v542_v15  ;;  %v447_v27 = vpack.c.bf16 %v446_v21, %v445_v19  ;;  %v391_v32 = vpack.c.bf16 %v389_v9, %v390_v10 }
  0xd8   : > { %483 = vst [vmem:[#allocation2 + $0x18] sm:$0x33] %v482_v16 }
  0xd9   : > { %v450_v33 = vunpack.c.l.bf16 %v447_v27  ;;  %v451_v36 = vunpack.c.h.bf16 %v447_v27  ;;  %v394_v31 = vunpack.c.l.bf16 %v391_v32  ;;  %v395_v37 = vunpack.c.h.bf16 %v391_v32  ;;  %v544_v27 = vld [vmem:[%s1373_s2] sm:$0x3] }
  0xdb   : > { %v454_v42 = vmul.f32 %v1237_v62, %v450_v33  ;;  %v455_v43 = vmul.f32 %v1251_v17, %v451_v36  ;;  %v398_v44 = vmul.f32 %v1264_v28, %v394_v31  ;;  %v399_v49 = vmul.f32 %v1266_v30, %v395_v37  ;;  %v1009_v50 = vpop.permute.xlu0 %1008 }
  0xdc   : > { %v1011_v51 = vunpack.i.h.bf16 %v1009_v50  ;;  %v1010_v52 = vunpack.i.l.bf16 %v1009_v50 }
  0xdd   : > { %v456_v53 = vpack.c.bf16 %v455_v43, %v454_v42  ;;  %v400_v54 = vpack.c.bf16 %v399_v49, %v398_v44 }
  0xde   : > { %v323_v20 = vsel %vm322_vm7, %v1010_v52, %v1011_v51  ;;  %v324_v26 = vsel %vm322_vm7, %v1011_v51, %v1010_v52  ;;  %v549_v39 = vld [vmem:[#allocation2 + $0x20] sm:$0x33] }
  0xdf   : > { %v458_v58 = vrot.slane %v456_v53, 6  ;;  %401 = vst [vmem:[#allocation2 + $0x8] sm:$0x33] %v400_v54  ;;  %v325_v59 = vpack.c.bf16 %v323_v20, %v324_v26  ;;  %v563_v60 = vunpack.c.l.b16 %v549_v39  ;;  %v564_v61 = vunpack.c.h.b16 %v549_v39  ;;  %v955_v11 = vld [vmem:[#allocation2 + $0x14] sm:$0xf0] }
  0xe0   : > { %v924_v14 = vld [vmem:[#allocation2 + $0x18] sm:$0xf0]  ;;  %v822_v53 = vld [vmem:[%s1378_s7] sm:$0xf] }
  0xe1   : > { %460 = vst [vmem:[#allocation2 + $0x10] sm:$0xcc] %v458_v58  ;;  %v339_v63 = vunpack.c.l.bf16 %v325_v59  ;;  %v340_v0 = vunpack.c.h.bf16 %v325_v59  ;;  %v569_v1 = vpack.c.b16 %v563_v60, %v563_v60  ;;  %v570_v4 = vpack.c.b16 %v564_v61, %v564_v61 }
  0xe3   : > { %v343_v40 = vmul.f32 %v1275_v55, %v339_v63  ;;  %v344_v5 = vmul.f32 %v1277_v57, %v340_v0  ;;  %v581_v6 = vsel %vm579_vm8, %v569_v1, 0  ;;  %v584_v7 = vsel %vm579_vm8, %v570_v4, 0 }
  0xe4   : > { %591 = vmatpush.bf16.msra.mxu0 %v581_v6  ;;  %604 = vmatpush.bf16.msra.mxu1 %v584_v7 }
  0xe5   : > { %v345_v8 = vpack.c.bf16 %v344_v5, %v343_v40 }
  0xe6   : > { %v953_v18 = vld [vmem:[#allocation2 + $0x4] sm:$0xf0]  ;;  %v916_v19 = vld [vmem:[#allocation2 + $0x8] sm:$0xf0] }
  0xe7   : > { %346 = vst [vmem:[#allocation2] sm:$0x33] %v345_v8 }
  0xe8   : > { %v922_v12 = vld [vmem:[#allocation2 + $0x10] sm:$0xf]  ;;  %v954_v13 = vld [vmem:[#allocation2 + $0x14] sm:$0xf] }
  0xe9   : > { %v923_v15 = vor.u32 %v955_v11, %v922_v12  ;;  %v927_v16 = vor.u32 %v954_v13, %v924_v14 }
  0xeb   : > { %592 = vmatpush.bf16.msra.mxu0 %v923_v15  ;;  %605 = vmatpush.bf16.msra.mxu1 %v927_v16 }
  0xee   : > { %v914_v21 = vld [vmem:[#allocation2] sm:$0xf]  ;;  %v952_v9 = vld [vmem:[#allocation2 + $0x4] sm:$0xf] }
  0xef   : > { %v915_v10 = vor.u32 %v953_v18, %v914_v21  ;;  %v919_v24 = vor.u32 %v952_v9, %v916_v19 }
  0xf1   : > { %593 = vmatpush.bf16.msra.mxu0 %v915_v10  ;;  %606 = vmatpush.bf16.msra.mxu1 %v919_v24 }
  0xf4   : > { %928 = vmatmul.msk.bf16.vlgmr.msra.gmra.mxu0 %vm575_vm9, %v544_v27  ;;  %929 = vmatmul.msk.bf16.vlgmr.msra.gmra.mxu1 %vm575_vm9, %v544_v27 }
 0x125   : > { %v616_v32 = vpop.permute.xlu2 %615 }
 0x13d   : > { %v624_v33 = vpop.permute.xlu0 %623 }
 0x171   : > { %v595_v36 = vpop.f32.mrf.mxu0  ;;  %v608_v31 = vpop.f32.mrf.mxu1 }
 0x172   : > { %v618_v37 = vmul.f32 %v616_v32, %v595_v36  ;;  %v619_v38 = vmul.f32 %v616_v32, %v608_v31 }
 0x174   : > { %v626_v41 = vadd.f32 %v624_v33, %v618_v37  ;;  %v627_v42 = vadd.f32 %v624_v33, %v619_v38 }
 0x176   : > { %v628_v43 = vmax.f32 %v626_v41, 0.0  ;;  %v629_v44 = vmax.f32 %v627_v42, 0.0 }
 0x178   : > { %v1039_v49 = vpack.i.bf16 %v629_v44, %v628_v43  ;;  %v688_v52 = vpack.c.bf16 %v629_v44, %v628_v43 }
 0x179   : > { %v597_v50 = vpop.f32.mrf.mxu0  ;;  %v610_v51 = vpop.f32.mrf.mxu1 }
 0x17a   : > { %1040 = vrot.lane.b32.xlu0 %v1039_v49, %s1068_s11  ;;  %1025 = vrot.lane.b32.xlu2 %v1039_v49, %s1073_s16  ;;  %689 = vst [vmem:[#allocation2 + $0x10] sm:$0x33] %v688_v52 }
 0x17b   : > { %1020 = vrot.lane.b32.xlu1 %v1039_v49, %s1071_s14 }
 0x182   : > { %1055 = vrot.lane.b32.xlu0 %v1039_v49, %s1074_s17  ;;  %1035 = vrot.lane.b32.xlu2 %v1039_v49, %s1072_s15  ;;  %s305_s17 = scalar_lea.vmem %s1379_s8, %s950_s29 }
 0x183   : > { %1030 = vrot.lane.b32.xlu1 %v1039_v49, %s1069_s12 }
 0x18a   : > { %1050 = vrot.lane.b32.xlu2 %v1039_v49, %s1075_s18 }
 0x18b   : > { %1045 = vrot.lane.b32.xlu1 %v1039_v49, %s1070_s13 }
 0x192   : > { %825 = vperm.xlu2 %1017, %v822_v53  }
 0x1d4   : > { %v1026_v54 = vpop.permute.xlu2 %1025 }
 0x1d5   : > { %v1028_v20 = vunpack.i.h.bf16 %v1026_v54  ;;  %v1027_v26 = vunpack.i.l.bf16 %v1026_v54 }
 0x1d7   : > { %v694_v39 = vsel %vm444_vm5, %v1027_v26, %v1028_v20  ;;  %v695_v58 = vsel %vm444_vm5, %v1028_v20, %v1027_v26 }
 0x1d8   : > { %v696_v59 = vpack.c.bf16 %v695_v58, %v694_v39 }
 0x1da   : > { %v697_v60 = vunpack.c.l.bf16 %v696_v59  ;;  %v698_v61 = vunpack.c.h.bf16 %v696_v59 }
 0x1dc   : > { %v699_v63 = vmul.f32 %v697_v60, %v1237_v62  ;;  %v700_v0 = vmul.f32 %v698_v61, %v1251_v17  ;;  %v1036_v1 = vpop.permute.xlu2 %1035 }
 0x1dd   : > { %v1038_v4 = vunpack.i.h.bf16 %v1036_v1  ;;  %v1037_v40 = vunpack.i.l.bf16 %v1036_v1 }
 0x1de   : > { %v701_v5 = vpack.c.bf16 %v700_v0, %v699_v63 }
 0x1df   : > { %v710_v6 = vsel %vm470_vm4, %v1037_v40, %v1038_v4  ;;  %v711_v7 = vsel %vm470_vm4, %v1038_v4, %v1037_v40 }
 0x1e0   : > { %v703_v8 = vrot.slane %v701_v5, 6  ;;  %v712_v11 = vpack.c.bf16 %v711_v7, %v710_v6 }
 0x1e2   : > { %705 = vst [vmem:[#allocation2 + $0x10] sm:$0xcc] %v703_v8  ;;  %v713_v12 = vunpack.c.l.bf16 %v712_v11  ;;  %v714_v13 = vunpack.c.h.bf16 %v712_v11 }
 0x1e4   : > { %v715_v14 = vmul.f32 %v713_v12, %v1222_v46  ;;  %v716_v62 = vmul.f32 %v714_v13, %v1233_v56  ;;  %v1051_v17 = vpop.permute.xlu2 %1050 }
 0x1e5   : > { %v1053_v15 = vunpack.i.h.bf16 %v1051_v17  ;;  %v1052_v16 = vunpack.i.l.bf16 %v1051_v17 }
 0x1e6   : > { %v717_v18 = vpack.c.bf16 %v716_v62, %v715_v14 }
 0x1e7   : > { %v634_v19 = vsel %vm322_vm7, %v1052_v16, %v1053_v15  ;;  %v635_v21 = vsel %vm322_vm7, %v1053_v15, %v1052_v16 }
 0x1e8   : > { %718 = vst [vmem:[#allocation2 + $0x18] sm:$0x33] %v717_v18  ;;  %v636_v9 = vpack.c.bf16 %v634_v19, %v635_v21 }
 0x1ea   : > { %v637_v10 = vunpack.c.l.bf16 %v636_v9  ;;  %v638_v24 = vunpack.c.h.bf16 %v636_v9 }
 0x1ec   : > { %v639_v27 = vmul.f32 %v637_v10, %v1275_v55  ;;  %v640_v46 = vmul.f32 %v638_v24, %v1277_v57  ;;  %v1041_v32 = vpop.permute.xlu0 %1040 }
 0x1ed   : > { %v1043_v56 = vunpack.i.h.bf16 %v1041_v32  ;;  %v1042_v33 = vunpack.i.l.bf16 %v1041_v32  ;;  %v1021_v36 = vpop.permute.xlu1 %1020 }
 0x1ee   : > { %v641_v31 = vpack.c.bf16 %v640_v46, %v639_v27  ;;  %v1023_v37 = vunpack.i.h.bf16 %v1021_v36  ;;  %v1022_v38 = vunpack.i.l.bf16 %v1021_v36 }
 0x1ef   : > { %v647_v41 = vsel %vm356_vm0, %v1042_v33, %v1043_v56  ;;  %v648_v42 = vsel %vm356_vm0, %v1043_v56, %v1042_v33 }
 0x1f0   : > { %642 = vst [vmem:[#allocation2] sm:$0x33] %v641_v31  ;;  %v649_v43 = vpack.c.bf16 %v647_v41, %v648_v42  ;;  %v739_v55 = vsel %vm519_vm3, %v1022_v38, %v1023_v37  ;;  %v740_v57 = vsel %vm519_vm3, %v1023_v37, %v1022_v38  ;;  %v940_v37 = vld [vmem:[#allocation2 + $0x10] sm:$0xf]  ;;  %v958_v41 = vld [vmem:[#allocation2 + $0x14] sm:$0xf] }
 0x1f1   : > { %v741_v44 = vpack.c.bf16 %v740_v57, %v739_v55 }
 0x1f2   : > { %v650_v49 = vunpack.c.l.bf16 %v649_v43  ;;  %v651_v50 = vunpack.c.h.bf16 %v649_v43 }
 0x1f3   : > { %v742_v51 = vunpack.c.l.bf16 %v741_v44  ;;  %v743_v52 = vunpack.c.h.bf16 %v741_v44 }
 0x1f4   : > { %v652_v53 = vmul.f32 %v650_v49, %v1172_v47  ;;  %v653_v54 = vmul.f32 %v651_v50, %v1174_v48  ;;  %v1056_v20 = vpop.permute.xlu0 %1055 }
 0x1f5   : > { %v744_v26 = vmul.f32 %v742_v51, %v538_v34  ;;  %v745_v39 = vmul.f32 %v743_v52, %v539_v45  ;;  %v1058_v58 = vunpack.i.h.bf16 %v1056_v20  ;;  %v1057_v59 = vunpack.i.l.bf16 %v1056_v20  ;;  %v1031_v60 = vpop.permute.xlu1 %1030  ;;  %v814_v34 = vld [vmem:[%s1377_s6] sm:$0xf] }
 0x1f6   : > { %v654_v61 = vpack.c.bf16 %v653_v54, %v652_v53  ;;  %v1033_v63 = vunpack.i.h.bf16 %v1031_v60  ;;  %v1032_v0 = vunpack.i.l.bf16 %v1031_v60  ;;  %817 = vperm.xlu1 %1059, %v814_v34   ;;  %v748_v51 = vld [vmem:[%s1376_s5] sm:$0x3] }
 0x1f7   : > { %v746_v1 = vpack.c.bf16 %v745_v39, %v744_v26  ;;  %v663_v4 = vsel %vm388_vm6, %v1057_v59, %v1058_v58  ;;  %v664_v47 = vsel %vm388_vm6, %v1058_v58, %v1057_v59  ;;  %v826_v39 = vpop.permute.xlu2 %825  ;;  %v833_v58 = vld.sshfl [vmem:[#allocation1] sm:$0xff pattern:$0x75316420]  ;;  %v834_v59 = vld.sshfl [vmem:[#allocation1 + $0x8] sm:$0xff pattern:$0x75316420] }
 0x1f8   : > { %v656_v48 = vrot.slane %v654_v61, 6  ;;  %v665_v40 = vpack.c.bf16 %v663_v4, %v664_v47  ;;  %v723_v25 = vsel %vm493_vm2, %v1032_v0, %v1033_v63  ;;  %v724_v29 = vsel %vm493_vm2, %v1033_v63, %v1032_v0 }
 0x1f9   : > { %747 = vst [vmem:[#allocation2 + $0x20] sm:$0x33] %v746_v1  ;;  %v725_v45 = vpack.c.bf16 %v724_v29, %v723_v25 }
 0x1fa   : > { %658 = vst [vmem:[#allocation2] sm:$0xcc] %v656_v48  ;;  %v666_v5 = vunpack.c.l.bf16 %v665_v40  ;;  %v667_v6 = vunpack.c.h.bf16 %v665_v40 }
 0x1fb   : > { %v726_v7 = vunpack.c.l.bf16 %v725_v45  ;;  %v727_v8 = vunpack.c.h.bf16 %v725_v45 }
 0x1fc   : > { %v668_v11 = vmul.f32 %v666_v5, %v1264_v28  ;;  %v669_v12 = vmul.f32 %v667_v6, %v1266_v30 }
 0x1fd   : > { %v728_v13 = vmul.f32 %v726_v7, %v1198_v22  ;;  %v729_v14 = vmul.f32 %v727_v8, %v1204_v23  ;;  %v1046_v62 = vpop.permute.xlu1 %1045 }
 0x1fe   : > { %v670_v17 = vpack.c.bf16 %v669_v12, %v668_v11  ;;  %v1048_v15 = vunpack.i.h.bf16 %v1046_v62  ;;  %v1047_v16 = vunpack.i.l.bf16 %v1046_v62 }
 0x1ff   : > { %v730_v18 = vpack.c.bf16 %v729_v14, %v728_v13 }
 0x200   : > { %671 = vst [vmem:[#allocation2 + $0x8] sm:$0x33] %v670_v17  ;;  %v676_v19 = vsel %vm411_vm1, %v1047_v16, %v1048_v15  ;;  %v677_v21 = vsel %vm411_vm1, %v1048_v15, %v1047_v16  ;;  %v753_v9 = vld [vmem:[#allocation2 + $0x20] sm:$0x33] }
 0x201   : > { %v732_v28 = vrot.slane %v730_v18, 6  ;;  %v678_v10 = vpack.c.bf16 %v676_v19, %v677_v21  ;;  %v767_v30 = vunpack.c.l.b16 %v753_v9  ;;  %v768_v24 = vunpack.c.h.b16 %v753_v9 }
 0x203   : > { %734 = vst [vmem:[#allocation2 + $0x18] sm:$0xcc] %v732_v28  ;;  %v679_v22 = vunpack.c.l.bf16 %v678_v10  ;;  %v680_v23 = vunpack.c.h.bf16 %v678_v10  ;;  %v773_v27 = vpack.c.b16 %v767_v30, %v767_v30  ;;  %v774_v46 = vpack.c.b16 %v768_v24, %v768_v24 }
 0x205   : > { %v681_v32 = vmul.f32 %v679_v22, %v1185_v2  ;;  %v682_v56 = vmul.f32 %v680_v23, %v1187_v3  ;;  %v783_v33 = vsel %vm579_vm8, %v773_v27, 0  ;;  %v786_v36 = vsel %vm579_vm8, %v774_v46, 0  ;;  %v932_v2 = vld [vmem:[#allocation2] sm:$0xf]  ;;  %v956_v3 = vld [vmem:[#allocation2 + $0x4] sm:$0xf] }
 0x206   : > { %793 = vmatpush.bf16.msra.mxu2 %v783_v33  ;;  %806 = vmatpush.bf16.msra.mxu3 %v786_v36 }
 0x207   : > { %v683_v35 = vpack.c.bf16 %v682_v56, %v681_v32 }
 0x209   : > { %v685_v31 = vrot.slane %v683_v35, 6 }
 0x20a   : > { %v959_v38 = vld [vmem:[#allocation2 + $0x14] sm:$0xf0]  ;;  %v942_v42 = vld [vmem:[#allocation2 + $0x18] sm:$0xf0] }
 0x20b   : > { %687 = vst [vmem:[#allocation2 + $0x8] sm:$0xcc] %v685_v31  ;;  %v941_v43 = vor.u32 %v959_v38, %v940_v37  ;;  %v945_v55 = vor.u32 %v958_v41, %v942_v42 }
 0x20d   : > { %794 = vmatpush.bf16.msra.mxu2 %v941_v43  ;;  %807 = vmatpush.bf16.msra.mxu3 %v945_v55 }
 0x212   : > { %v957_v57 = vld [vmem:[#allocation2 + $0x4] sm:$0xf0]  ;;  %v934_v44 = vld [vmem:[#allocation2 + $0x8] sm:$0xf0] }
 0x213   : > { %v933_v49 = vor.u32 %v957_v57, %v932_v2  ;;  %v937_v50 = vor.u32 %v956_v3, %v934_v44 }
 0x215   : > { %795 = vmatpush.bf16.msra.mxu2 %v933_v49  ;;  %808 = vmatpush.bf16.msra.mxu3 %v937_v50 }
 0x218   : > { %946 = vmatmul.msk.bf16.vlgmr.msra.gmra.mxu2 %vm575_vm9, %v748_v51  ;;  %947 = vmatmul.msk.bf16.vlgmr.msra.gmra.mxu3 %vm575_vm9, %v748_v51 }
 0x268   : > { %v818_v52 = vpop.permute.xlu1 %817 }
 0x29b   : > { %v797_v53 = vpop.f32.mrf.mxu2  ;;  %v810_v54 = vpop.f32.mrf.mxu3 }
 0x29c   : > { %v820_v20 = vmul.f32 %v818_v52, %v797_v53  ;;  %v821_v26 = vmul.f32 %v818_v52, %v810_v54 }
 0x29e   : > { %v828_v60 = vadd.f32 %v826_v39, %v820_v20  ;;  %v829_v61 = vadd.f32 %v826_v39, %v821_v26 }
 0x2a0   : > { %v837_v63 = vadd.f32 %v833_v58, %v828_v60  ;;  %v838_v0 = vadd.f32 %v834_v59, %v829_v61 }
 0x2a2   : > { %v840_v1 = vmax.f32 %v838_v0, 0.0  ;;  %v839_v48 = vmax.f32 %v837_v63, 0.0 }
 0x2a3   : > { %v799_v4 = vpop.f32.mrf.mxu2  ;;  %v812_v47 = vpop.f32.mrf.mxu3 }
 0x2a4   : > { %v843_v40 = vrot.slane %v840_v1, 4 }
 0x2a6   : > { %v845_v25 = vsel %vm844_vm10, %v839_v48, %v843_v40 }
 0x2a7   : > { %847 = vst [vmem:[%s305_s17] sm:$0xff] %v845_v25 }
 0x2a8 PF: > { %s18_s27 = sadd.s32 1, %s1066_s27  }
 0x2a9   : > { %p15_p4 = scmp.ge.s32.totalorder %s18_s27, 4  }
 0x2ab   :  { %17 = sbr.rel (!%p15_p4) target bundleno = 1 (0x1), region = 82 }

</bundles_post_ra>
